<compile_context>
chip_gen: v5e
topology: v5e:2x2
jax: 0.10.0
libtpu: 0.0.40
codegen_flags: <defaults>
</compile_context>

<pallas_src>
import functools

import numpy as np
import jax
import jax.numpy as jnp
from jax import lax
from jax.experimental import pallas as pl
from jax.experimental.pallas import tpu as pltpu


N_RESI = 20   # residue vocabulary size (nn.Embedding(20, H/2))
N_ATOM = 95   # atom vocabulary size    (nn.Embedding(95, H/2))


def _round_up(x, m):
    return ((x + m - 1) // m) * m


def _swish(v):
    return v * jax.nn.sigmoid(v)


# ----------------------------------------------------------------- kernels ---
def _node_kernel(xidx_ref, m_ref, packed_ref, *, mxu_dtype):
    """Fused node stage: one 2-hot matmul -> [x_node | x_node@W1 | x_node@W2 | 0]."""
    f32 = jnp.float32
    tn = xidx_ref.shape[0]
    n_rows = m_ref.shape[0]                       # 128 (= 20 + 95, zero padded)

    x0 = xidx_ref[:, 0:1]                         # residue type in [0, 20)
    x1 = xidx_ref[:, 1:2]                         # atom type    in [0, 95)

    # 2-hot mask: col x0 selects the residue half-row, col 20+x1 the atom half-row.
    # Out-of-range indices silently select nothing (all-zero row), unlike PyTorch.
    cols = lax.broadcasted_iota(jnp.int32, (tn, n_rows), 1)
    oh = jnp.logical_or(cols == x0, cols == (x1 + N_RESI)).astype(mxu_dtype)

    packed_ref[...] = jnp.dot(oh, m_ref[...],
                              preferred_element_type=f32).astype(packed_ref.dtype)


def _edge_kernel(ij_ref, rbf_ref, pstack_ref, w_rbf_ref, b_rbf_ref,
                 w3_ref, b_lin_ref, out_ref, *, mxu_dtype):
    """Per-edge stage: fused 2-hot gather + rbf branch + output projection."""
    f32 = jnp.float32
    te = ij_ref.shape[0]
    two_n = pstack_ref.shape[0]
    n_stack = two_n // 2

    idx = ij_ref[...]                              # [te, 2] int32
    i_col = idx[:, 0:1]
    j_col = idx[:, 1:2]

    # Single 2-hot mask over [p1; p2]: col i selects p1[i], col N+j selects p2[j].
    # TODO(synk): at production node counts replace this O(te*N) mask build with a
    # scalar-prefetch / DMA-gather path (the iota/compare build is VALU-bound on
    # v6e/v7x once N is large).
    cols = lax.broadcasted_iota(jnp.int32, (te, two_n), 1)
    oh2 = jnp.logical_or(cols == i_col, cols == (j_col + n_stack)).astype(mxu_dtype)

    # x_node[i] @ W1 + x_node[j] @ W2 in one MXU pass.
    gathered = jnp.dot(oh2, pstack_ref[...], preferred_element_type=f32)   # [te, H]

    # rbf branch: swish(lin_rbf(rbf)); activations / biases stay f32.
    rbf_h = _swish(jnp.dot(rbf_ref[...], w_rbf_ref[...],
                           preferred_element_type=f32) + b_rbf_ref[...])   # [te, H]

    pre = gathered + jnp.dot(rbf_h.astype(mxu_dtype), w3_ref[...],
                             preferred_element_type=f32) + b_lin_ref[...]
    out = _swish(pre)
    # Lane-dense store: row-major repack [te, H] -> out_ref.shape (e.g. [te*H/128, 128]).
    out_ref[...] = out.reshape(out_ref.shape).astype(out_ref.dtype)


# ----------------------------------------------------------------- wrapper ---
def embedding_ppg_block(x_idx, rbf, i, j, params, *,
                        mxu_dtype=jnp.bfloat16, node_tile=128, edge_tile=256):
    N = x_idx.shape[0]
    E, R = rbf.shape
    H = params["w_rbf"].shape[1]
    Hh = H // 2
    f32 = jnp.float32

    # ---- one-time parameter prep (pure layout / algebraic folds, all in f32) ----
    emb_rows = _round_up(N_RESI + N_ATOM, 128)           # 128: lane-aligned K
    emb_tbl = jnp.zeros((emb_rows, H), f32)
    emb_tbl = emb_tbl.at[:N_RESI, :Hh].set(params["resi_tbl"].astype(f32))
    emb_tbl = emb_tbl.at[N_RESI:N_RESI + N_ATOM, Hh:].set(params["atom_tbl"].astype(f32))

    w_lin = params["w_lin"].astype(f32)                  # [3H, H], stored [in, out]
    w1, w2, w3 = w_lin[:H], w_lin[H:2 * H], w_lin[2 * H:]

    # Fused node matrix: one matmul yields [x_node | x_node@W1 | x_node@W2 | 0-pad].
    P = _round_up(3 * H, 128)
    m_tbl = jnp.zeros((emb_rows, P), f32)
    m_tbl = m_tbl.at[:, :H].set(emb_tbl)
    m_tbl = m_tbl.at[:, H:2 * H].set(emb_tbl @ w1)       # folds computed in f32
    m_tbl = m_tbl.at[:, 2 * H:3 * H].set(emb_tbl @ w2)
    m_tbl = m_tbl.astype(mxu_dtype)

    w3 = w3.astype(mxu_dtype)
    w_rbf = params["w_rbf"].astype(mxu_dtype)
    b_rbf = params["b_rbf"].astype(f32).reshape(1, H)
    b_lin = params["b_lin"].astype(f32).reshape(1, H)

    # ---- tiling / padding (no divisibility requirements on N, E) ----------------
    node_tile = max(64, (node_tile // 64) * 64)          # keeps 2*N_pad % 128 == 0
    edge_tile = max(32, (edge_tile // 32) * 32)
    tN = min(node_tile, _round_up(N, 64))
    tE = min(edge_tile, _round_up(E, 32))
    N_pad = _round_up(N, tN)
    E_pad = _round_up(E, tE)

    x_idx = x_idx.astype(jnp.int32)
    if N_pad > N:                                        # pad with valid index 0
        x_idx = jnp.pad(x_idx, ((0, N_pad - N), (0, 0)))

    ij = jnp.stack([i.astype(jnp.int32), j.astype(jnp.int32)], axis=1)   # [E, 2]
    rbf_in = rbf.astype(mxu_dtype)
    if E_pad > E:
        ij = jnp.pad(ij, ((0, E_pad - E), (0, 0)))
        rbf_in = jnp.pad(rbf_in, ((0, E_pad - E), (0, 0)))

    def full(a):
        return pl.BlockSpec(a.shape, lambda *_: (0,) * a.ndim)

    cparams = pltpu.CompilerParams(
        dimension_semantics=("parallel",),
        vmem_limit_bytes=32 << 20,       # fits v5e/v6e (128 MiB) and v7x (64 MiB phys)
    )

    # ---- stage 1: fused node embedding + hoisted projections (1 matmul) ---------
    packed = pl.pallas_call(
        functools.partial(_node_kernel, mxu_dtype=mxu_dtype),
        out_shape=jax.ShapeDtypeStruct((N_pad, P), f32),
        grid=(N_pad // tN,),
        in_specs=[pl.BlockSpec((tN, 2), lambda n: (n, 0)), full(m_tbl)],
        out_specs=pl.BlockSpec((tN, P), lambda n: (n, 0)),
        compiler_params=cparams,
    )(x_idx, m_tbl)

    x_node = packed[:N, :H]                              # f32, returned as-is
    # p1 / p2 hold values already rounded to mxu_dtype (m_tbl), so this cast is exact.
    pstack = jnp.concatenate([packed[:, H:2 * H], packed[:, 2 * H:3 * H]],
                             axis=0).astype(mxu_dtype)   # [2*N_pad, H]

    # ---- stage 2: per-edge 2-hot gather + rbf branch + output projection --------
    if (tE * H) % 128 == 0:                              # lane-dense packed output
        out_block = (tE * H // 128, 128)
        out_total = (E_pad * H // 128, 128)
    else:
        out_block = (tE, H)
        out_total = (E_pad, H)

    edge_flat = pl.pallas_call(
        functools.partial(_edge_kernel, mxu_dtype=mxu_dtype),
        out_shape=jax.ShapeDtypeStruct(out_total, f32),
        grid=(E_pad // tE,),
        in_specs=[pl.BlockSpec((tE, 2), lambda e: (e, 0)),
                  pl.BlockSpec((tE, R), lambda e: (e, 0)),
                  full(pstack), full(w_rbf), full(b_rbf), full(w3), full(b_lin)],
        out_specs=pl.BlockSpec(out_block, lambda e: (e, 0)),
        compiler_params=cparams,
    )(ij, rbf_in, pstack, w_rbf, b_rbf, w3, b_lin)

    edge = edge_flat.reshape(E_pad, H)[:E]
    return edge, x_node


# -------------------------------------------------------- reference (JAX) ----
def embedding_ppg_block_ref(x_idx, rbf, i, j, params):
    swish = lambda v: v * jax.nn.sigmoid(v)
    x_node = jnp.concatenate([params["resi_tbl"][x_idx[:, 0]],
                              params["atom_tbl"][x_idx[:, 1]]], axis=-1)
    rbf_h = swish(rbf @ params["w_rbf"] + params["b_rbf"])
    cat = jnp.concatenate([x_node[i], x_node[j], rbf_h], axis=-1)
    edge = swish(cat @ params["w_lin"] + params["b_lin"])
    return edge, x_node


# -------------------------------------------------------------------- main ---
if __name__ == "__main__":
    H = 32      # hidden_channels (factor = 8 -> each embedding is 16-wide)
    R = 8       # num_radial
    N = 24      # number of nodes
    E = 64      # number of edges

    key = jax.random.PRNGKey(0)
    ks = iter(jax.random.split(key, 16))
    s3 = float(np.sqrt(3.0))

    params = {
        "resi_tbl": jax.random.uniform(next(ks), (N_RESI, H // 2), jnp.float32, -s3, s3),
        "atom_tbl": jax.random.uniform(next(ks), (N_ATOM, H // 2), jnp.float32, -s3, s3),
        "w_rbf": (0.2 * jax.random.normal(next(ks), (R, H))).astype(jnp.float32),
        "b_rbf": (0.1 * jax.random.normal(next(ks), (1, H))).astype(jnp.float32),
        "w_lin": (0.2 * jax.random.normal(next(ks), (3 * H, H))).astype(jnp.float32),
        "b_lin": (0.1 * jax.random.normal(next(ks), (1, H))).astype(jnp.float32),
    }

    x_idx = jnp.stack(
        [jax.random.randint(next(ks), (N,), 0, N_RESI, dtype=jnp.int32),
         jax.random.randint(next(ks), (N,), 0, N_ATOM, dtype=jnp.int32)], axis=1)
    rbf = jax.random.normal(next(ks), (E, R), dtype=jnp.float32)
    i_idx = jax.random.randint(next(ks), (E,), 0, N, dtype=jnp.int32)
    j_idx = jax.random.randint(next(ks), (E,), 0, N, dtype=jnp.int32)

    ref_edge, ref_node = embedding_ppg_block_ref(x_idx, rbf, i_idx, j_idx, params)
    ref_edge, ref_node = jax.block_until_ready((ref_edge, ref_node))

    # f32 MXU operands: faithful to the PyTorch module, tight tolerance.
    edge, node = embedding_ppg_block(x_idx, rbf, i_idx, j_idx, params,
                                     mxu_dtype=jnp.float32)
    edge, node = jax.block_until_ready((edge, node))
    assert edge.shape == (E, H) and node.shape == (N, H)
    np.testing.assert_allclose(np.asarray(node), np.asarray(ref_node), rtol=1e-5, atol=1e-5)
    np.testing.assert_allclose(np.asarray(edge), np.asarray(ref_edge), rtol=1e-4, atol=1e-4)

    # Default bf16 MXU operands (one-hot masks exact in bf16, folds rounded once),
    # f32 accumulation + f32 activations; compared against the f32 module reference.
    edge_bf, node_bf = embedding_ppg_block(x_idx, rbf, i_idx, j_idx, params)
    edge_bf, node_bf = jax.block_until_ready((edge_bf, node_bf))
    np.testing.assert_allclose(np.asarray(node_bf), np.asarray(ref_node), rtol=2e-2, atol=2e-2)
    np.testing.assert_allclose(np.asarray(edge_bf), np.asarray(ref_edge), rtol=5e-2, atol=5e-2)

    print("KERNEL_OK")
</pallas_src>

<mosaic_0001>
module attributes {stable_mosaic.version = 11 : i64} {
  func.func @_node_kernel(%arg0: i32, %arg1: memref<64x2xi32, #tpu.memory_space<vmem>>, %arg2: memref<128x128xf32, #tpu.memory_space<vmem>>, %arg3: memref<64x128xf32, #tpu.memory_space<vmem>>) attributes {dimension_semantics = [#tpu.dimension_semantics<parallel>], iteration_bounds = array<i64: 1>, scalar_prefetch = 0 : i64, scratch_operands = 0 : i64, tpu.core_type = #tpu.core_type<tc>, window_params = [{transform_indices = @transform_0, window_bounds = array<i64: 64, 2>}, {pipeline_mode = #tpu.pipeline_mode<synchronous>, transform_indices = @transform_1, window_bounds = array<i64: 128, 128>}, {transform_indices = @transform_2, window_bounds = array<i64: 64, 128>}]} {
    %c0 = arith.constant 0 : index
    %c0_0 = arith.constant 0 : index
    %0 = vector.load %arg1[%c0, %c0_0] : memref<64x2xi32, #tpu.memory_space<vmem>>, vector<64x1xi32>
    %c0_1 = arith.constant 0 : index
    %c1 = arith.constant 1 : index
    %1 = vector.load %arg1[%c0_1, %c1] : memref<64x2xi32, #tpu.memory_space<vmem>>, vector<64x1xi32>
    %2 = tpu.iota {dimensions = array<i32: 1>} : vector<64x128xi32>
    %3 = vector.broadcast %0 : vector<64x1xi32> to vector<64x128xi32>
    %4 = arith.cmpi eq, %2, %3 : vector<64x128xi32>
    %c20_i32 = arith.constant 20 : i32
    %5 = vector.broadcast %c20_i32 : i32 to vector<64x1xi32>
    %6 = arith.addi %1, %5 : vector<64x1xi32>
    %7 = vector.broadcast %6 : vector<64x1xi32> to vector<64x128xi32>
    %8 = arith.cmpi eq, %2, %7 : vector<64x128xi32>
    %9 = arith.ori %4, %8 : vector<64x128xi1>
    %10 = arith.extui %9 : vector<64x128xi1> to vector<64x128xi32>
    %11 = arith.sitofp %10 : vector<64x128xi32> to vector<64x128xf32>
    %c0_2 = arith.constant 0 : index
    %c0_3 = arith.constant 0 : index
    %12 = vector.load %arg2[%c0_2, %c0_3] : memref<128x128xf32, #tpu.memory_space<vmem>>, vector<128x128xf32>
    %cst = arith.constant dense<0.000000e+00> : vector<64x128xf32>
    %13 = tpu.matmul %11, %12, %cst {dimension_numbers = #tpu.dot_dimension_numbers<[1], [0], [0], [1], [0, 0, 1, 1], [], []>} : vector<64x128xf32>, vector<128x128xf32>, vector<64x128xf32> -> vector<64x128xf32>
    %c0_4 = arith.constant 0 : index
    %c0_5 = arith.constant 0 : index
    %14 = vector.load %arg3[%c0_4, %c0_5] : memref<64x128xf32, #tpu.memory_space<vmem>>, vector<64x128xf32>
    tpu.vector_store %arg3[%c0_4, %c0_5], %13 {strides = array<i32>} : memref<64x128xf32, #tpu.memory_space<vmem>>, vector<64x128xf32>,
    return
  }
  func.func @transform_0(%arg0: i32) -> (i32, i32) {
    %c0_i32 = arith.constant 0 : i32
    %c0_i32_0 = arith.constant 0 : i32
    return %arg0, %c0_i32 : i32, i32
  }
  func.func @transform_1(%arg0: i32) -> (i32, i32) {
    %c0_i32 = arith.constant 0 : i32
    %c0_i32_0 = arith.constant 0 : i32
    %c0_i32_1 = arith.constant 0 : i32
    return %c0_i32, %c0_i32_0 : i32, i32
  }
  func.func @transform_2(%arg0: i32) -> (i32, i32) {
    %c0_i32 = arith.constant 0 : i32
    %c0_i32_0 = arith.constant 0 : i32
    return %arg0, %c0_i32 : i32, i32
  }
}

</mosaic_0001>

<bundles_post_ra>
// kernel: tpu_custom_call.1
= control target key start
LH: loop header
LB: loop body
LE: loop exit
PB: predicated region body
PF: predicated region fallthrough
CT: control target
= control target key end

     0   :  { %7 = vsyncpa [#allocation3], 0  ;;  %s415_s0 = inlined_call_operand.vmem [shape: s32[64,2], index: 0, kind: input, shape index: {}]   ;;  %s416_s1 = inlined_call_operand.hbm [shape: f32[128,128], index: 1, kind: input, shape index: {}]   ;;  %s417_s2 = inlined_call_operand.hbm [shape: f32[64,128], index: 2, kind: output, shape index: {}]  }
   0x1   :  { %8 = vsyncpa [#allocation4], 0  ;;  %s15_s11 = sshll.u32 %s416_s1, 4  ;;  %s349_s12 = smov [#allocation2]   ;;  %s16_s11 = int_to_ptr.hbm [resolvable:$true] %s15_s11 }
   0x2   :  { %s17_s13 = sshll.u32 %s349_s12, 4  ;;  %s350_s14 = smov 128   ;;  %s18_s13 = int_to_ptr.vmem [resolvable:$true] %s17_s13 }
   0x3   :  { %s351_s15 = smov 8  }
   0x4   :  { %23 = dma.hbm_to_vmem [thread:$0]  %s16_s11, 2048, %s18_s13, [#allocation3], %s350_s14, %s350_s14, %s351_s15  }
   0x5   :  { %345 = dma.done.wait [#allocation3], 2048  }
   0x6   :  { %346 = vsyncadd [#allocation3], 4294965248  ;;  %v352_v0 = vmov 0   ;;  %v353_v1 = vmov 1   ;;  %v32_v2 = vld [vmem:[%s415_s0 + $0x20] sm:$0xff]  ;;  %v34_v5 = vld [vmem:[%s415_s0 + $0x30] sm:$0xff]  ;;  %v36_v36 = vlaneseq }
   0x7   :  { %289 = vset.pattern.permute.xlu0 %v352_v0  ;;  %291 = vset.pattern.permute.xlu1 %v353_v1  ;;  %v28_v3 = vld [vmem:[%s415_s0] sm:$0xff]  ;;  %v74_v4 = vadd.s32 20, %v32_v2  ;;  %v30_v6 = vld [vmem:[%s415_s0 + $0x10] sm:$0xff]  ;;  %v76_v7 = vadd.s32 20, %v34_v5  ;;  %v149_v8 = vld [vmem:[#allocation2 + $0x78] sm:$0xff]  ;;  %v354_v42 = vmov 1.0  }
   0x8   :  { %290 = vset.pattern.permute.xlu2 %v352_v0  ;;  %51 = vperm.xlu0 %289, %v32_v2   ;;  %v148_v9 = vld [vmem:[#allocation2 + $0x70] sm:$0xff]  ;;  %v70_v10 = vadd.s32 20, %v28_v3  ;;  %v33_v11 = vld [vmem:[%s415_s0 + $0x28] sm:$0xff]  ;;  %v72_v12 = vadd.s32 20, %v30_v6  ;;  %v146_v14 = vld [vmem:[#allocation2 + $0x60] sm:$0xff]  ;;  %v37_v38 = vand.u32 127, %v36_v36 }
   0x9   :  { %39 = vperm.xlu2 %290, %v28_v3   ;;  %91 = vperm.xlu1 %291, %v74_v4   ;;  %v147_v13 = vld [vmem:[#allocation2 + $0x68] sm:$0xff]  ;;  %v35_v15 = vld [vmem:[%s415_s0 + $0x38] sm:$0xff]  ;;  %v144_v17 = vld [vmem:[#allocation2 + $0x50] sm:$0xff]  ;;  %v75_v18 = vadd.s32 20, %v33_v11  ;;  %s205_s6 = sshll.u32 %s417_s2, 4  ;;  %s206_s6 = int_to_ptr.hbm [resolvable:$true] %s205_s6 }
   0xa   :  { %235 = vmatpush.msra.mxu2 %v149_v8  ;;  %236 = vmatpush.msra.mxu3 %v149_v8  ;;  %v145_v16 = vld [vmem:[#allocation2 + $0x58] sm:$0xff]  ;;  %v77_v19 = vadd.s32 20, %v35_v15  ;;  %v143_v20 = vld [vmem:[#allocation2 + $0x48] sm:$0xff]  ;;  %v142_v25 = vld [vmem:[#allocation2 + $0x40] sm:$0xff] }
   0xb   :  { %150 = vmatpush.msra.mxu0 %v149_v8  ;;  %234 = vmatpush.msra.mxu1 %v149_v8  ;;  %v29_v21 = vld [vmem:[%s415_s0 + $0x8] sm:$0xff]  ;;  %v31_v23 = vld [vmem:[%s415_s0 + $0x18] sm:$0xff]  ;;  %v140_v27 = vld [vmem:[#allocation2 + $0x30] sm:$0xff]  ;;  %s355_s0 = smov [#allocation5]  }
   0xc   :  { %238 = vmatpush.msra.mxu2 %v148_v9  ;;  %239 = vmatpush.msra.mxu3 %v148_v9  ;;  %v71_v22 = vadd.s32 20, %v29_v21  ;;  %v73_v24 = vadd.s32 20, %v31_v23  ;;  %v141_v26 = vld [vmem:[#allocation2 + $0x38] sm:$0xff]  ;;  %v139_v28 = vld [vmem:[#allocation2 + $0x28] sm:$0xff]  ;;  %v138_v29 = vld [vmem:[#allocation2 + $0x20] sm:$0xff]  ;;  %s203_s3 = sshll.u32 %s355_s0, 4  ;;  %s204_s3 = int_to_ptr.vmem [resolvable:$true] %s203_s3 }
   0xd   :  { %151 = vmatpush.msra.mxu0 %v148_v9  ;;  %237 = vmatpush.msra.mxu1 %v148_v9  ;;  %v137_v30 = vld [vmem:[#allocation2 + $0x18] sm:$0xff]  ;;  %v136_v31 = vld [vmem:[#allocation2 + $0x10] sm:$0xff]  ;;  %v135_v32 = vld [vmem:[#allocation2 + $0x8] sm:$0xff] }
   0xe   :  { %241 = vmatpush.msra.mxu2 %v147_v13  ;;  %242 = vmatpush.msra.mxu3 %v147_v13  ;;  %v134_v33 = vld [vmem:[#allocation2] sm:$0xff] }
   0xf   :  { %152 = vmatpush.msra.mxu0 %v147_v13  ;;  %240 = vmatpush.msra.mxu1 %v147_v13 }
  0x10   :  { %57 = vperm.xlu0 %289, %v34_v5   ;;  %244 = vmatpush.msra.mxu2 %v146_v14 }
  0x11   :  { %45 = vperm.xlu2 %290, %v30_v6   ;;  %97 = vperm.xlu1 %291, %v76_v7  }
  0x12   :  { %245 = vmatpush.msra.mxu3 %v146_v14  ;;  %247 = vmatpush.msra.mxu2 %v145_v16 }
  0x13   :  { %153 = vmatpush.msra.mxu0 %v146_v14  ;;  %243 = vmatpush.msra.mxu1 %v146_v14 }
  0x14   :  { %248 = vmatpush.msra.mxu3 %v145_v16  ;;  %250 = vmatpush.msra.mxu2 %v144_v17 }
  0x15   :  { %154 = vmatpush.msra.mxu0 %v145_v16  ;;  %246 = vmatpush.msra.mxu1 %v145_v16 }
  0x16   :  { %251 = vmatpush.msra.mxu3 %v144_v17  ;;  %253 = vmatpush.msra.mxu2 %v143_v20 }
  0x17   :  { %155 = vmatpush.msra.mxu0 %v144_v17  ;;  %249 = vmatpush.msra.mxu1 %v144_v17 }
  0x18   :  { %292 = vset.pattern.permute.xlu0 %v353_v1  ;;  %254 = vmatpush.msra.mxu3 %v143_v20 }
  0x19   :  { %54 = vperm.xlu2 %290, %v33_v11   ;;  %79 = vperm.xlu0 %292, %v70_v10  }
  0x1a   :  { %85 = vperm.xlu1 %291, %v72_v12   ;;  %156 = vmatpush.msra.mxu0 %v143_v20 }
  0x1b   :  { %252 = vmatpush.msra.mxu1 %v143_v20  ;;  %256 = vmatpush.msra.mxu2 %v142_v25 }
  0x1c   :  { %257 = vmatpush.msra.mxu3 %v142_v25  ;;  %157 = vmatpush.msra.mxu0 %v142_v25 }
  0x1d   :  { %255 = vmatpush.msra.mxu1 %v142_v25  ;;  %259 = vmatpush.msra.mxu2 %v141_v26 }
  0x1e   :  { %260 = vmatpush.msra.mxu3 %v141_v26  ;;  %158 = vmatpush.msra.mxu0 %v141_v26 }
  0x1f   :  { %258 = vmatpush.msra.mxu1 %v141_v26  ;;  %262 = vmatpush.msra.mxu2 %v140_v27 }
  0x20   :  { %263 = vmatpush.msra.mxu3 %v140_v27  ;;  %159 = vmatpush.msra.mxu0 %v140_v27 }
  0x21   :  { %294 = vset.pattern.permute.xlu2 %v353_v1  ;;  %100 = vperm.xlu0 %292, %v77_v19  }
  0x22   :  { %94 = vperm.xlu2 %294, %v75_v18   ;;  %293 = vset.pattern.permute.xlu1 %v352_v0 }
  0x23   :  { %60 = vperm.xlu1 %293, %v35_v15   ;;  %261 = vmatpush.msra.mxu1 %v140_v27 }
  0x24   :  { %265 = vmatpush.msra.mxu2 %v139_v28  ;;  %266 = vmatpush.msra.mxu3 %v139_v28 }
  0x25   :  { %160 = vmatpush.msra.mxu0 %v139_v28  ;;  %264 = vmatpush.msra.mxu1 %v139_v28 }
  0x26   :  { %268 = vmatpush.msra.mxu2 %v138_v29  ;;  %269 = vmatpush.msra.mxu3 %v138_v29 }
  0x27   :  { %161 = vmatpush.msra.mxu0 %v138_v29  ;;  %267 = vmatpush.msra.mxu1 %v138_v29 }
  0x28   :  { %271 = vmatpush.msra.mxu2 %v137_v30  ;;  %272 = vmatpush.msra.mxu3 %v137_v30 }
  0x29   :  { %82 = vperm.xlu0 %292, %v71_v22   ;;  %162 = vmatpush.msra.mxu0 %v137_v30 }
  0x2a   :  { %295 = vset.pattern.permute.xlu2 %v352_v0  ;;  %270 = vmatpush.msra.mxu1 %v137_v30 }
  0x2b   :  { %48 = vperm.xlu2 %295, %v31_v23   ;;  %42 = vperm.xlu1 %293, %v29_v21  }
  0x2c   :  { %274 = vmatpush.msra.mxu2 %v136_v31  ;;  %275 = vmatpush.msra.mxu3 %v136_v31 }
  0x2d   :  { %163 = vmatpush.msra.mxu0 %v136_v31  ;;  %273 = vmatpush.msra.mxu1 %v136_v31 }
  0x2e   :  { %277 = vmatpush.msra.mxu2 %v135_v32  ;;  %278 = vmatpush.msra.mxu3 %v135_v32 }
  0x2f   :  { %164 = vmatpush.msra.mxu0 %v135_v32  ;;  %276 = vmatpush.msra.mxu1 %v135_v32 }
  0x30   :  { %280 = vmatpush.msra.mxu2 %v134_v33  ;;  %281 = vmatpush.msra.mxu3 %v134_v33 }
  0x31   :  { %165 = vmatpush.msra.mxu0 %v134_v33  ;;  %279 = vmatpush.msra.mxu1 %v134_v33 }
  0x33   :  { %296 = vset.pattern.permute.xlu1 %v353_v1 }
  0x34   :  { %88 = vperm.xlu1 %296, %v73_v24  }
  0x63   :  { %v40_v34 = vpop.permute.xlu2 %39 }
  0x64   :  { %vm62_vm9 = vcmp.eq.s32.totalorder %v37_v38, %v40_v34 }
  0x6b   :  { %v46_v35 = vpop.permute.xlu2 %45 }
  0x6c   :  { %vm64_vm11 = vcmp.eq.s32.totalorder %v37_v38, %v46_v35 }
  0x73   :  { %v55_v37 = vpop.permute.xlu2 %54 }
  0x74   :  { %vm67_vm3 = vcmp.eq.s32.totalorder %v37_v38, %v55_v37 }
  0x7a   :  { %v52_v39 = vpop.permute.xlu0 %51 }
  0x7b   :  { %vm66_vm0 = vcmp.eq.s32.totalorder %v37_v38, %v52_v39  ;;  %v92_v40 = vpop.permute.xlu1 %91 }
  0x7c   :  { %vm106_vm1 = vcmp.eq.s32.totalorder %v37_v38, %v92_v40  ;;  %v95_v41 = vpop.permute.xlu2 %94 }
  0x7d   :  { %vm114_vm2 = vmor %vm66_vm0, %vm106_vm1  ;;  %vm107_vm4 = vcmp.eq.s32.totalorder %v37_v38, %v95_v41 }
  0x7e   :  { %230 = vmatmul.msk.f32.vlgmr.msra.gmra.mxu2 %vm114_vm2, %v354_v42  ;;  %vm115_vm6 = vmor %vm67_vm3, %vm107_vm4 }
  0x82   :  { %v58_v43 = vpop.permute.xlu0 %57 }
  0x83   :  { %vm68_vm5 = vcmp.eq.s32.totalorder %v37_v38, %v58_v43  ;;  %v98_v44 = vpop.permute.xlu1 %97 }
  0x84   :  { %vm108_vm7 = vcmp.eq.s32.totalorder %v37_v38, %v98_v44 }
  0x85   :  { %vm116_vm8 = vmor %vm68_vm5, %vm108_vm7  ;;  %v49_v51 = vpop.permute.xlu2 %48 }
  0x86   :  { %231 = vmatmul.msk.f32.gmra.mxu2 %vm115_vm6, %v354_v42  ;;  %232 = vmatmul.msk.f32.vlgmr.msra.gmra.mxu3 %vm116_vm8, %v354_v42  ;;  %vm65_vm5 = vcmp.eq.s32.totalorder %v37_v38, %v49_v51 }
  0x8b   :  { %v80_v45 = vpop.permute.xlu0 %79 }
  0x8c   :  { %vm102_vm10 = vcmp.eq.s32.totalorder %v37_v38, %v80_v45  ;;  %v86_v46 = vpop.permute.xlu1 %85 }
  0x8d   :  { %vm110_vm12 = vmor %vm62_vm9, %vm102_vm10  ;;  %vm104_vm13 = vcmp.eq.s32.totalorder %v37_v38, %v86_v46 }
  0x8e   :  { %vm112_vm14 = vmor %vm64_vm11, %vm104_vm13  ;;  %226 = vmatmul.msk.f32.vlgmr.msra.gmra.mxu0 %vm110_vm12, %v354_v42 }
  0x8f   :  { %228 = vmatmul.msk.f32.vlgmr.msra.gmra.mxu1 %vm112_vm14, %v354_v42 }
  0x93   :  { %v101_v47 = vpop.permute.xlu0 %100 }
  0x94   :  { %vm109_vm15 = vcmp.eq.s32.totalorder %v37_v38, %v101_v47 }
  0x95   :  { %v61_v48 = vpop.permute.xlu1 %60 }
  0x96   :  { %vm69_vm0 = vcmp.eq.s32.totalorder %v37_v38, %v61_v48 }
  0x97   :  { %vm117_vm1 = vmor %vm69_vm0, %vm109_vm15 }
  0x98   :  { %233 = vmatmul.msk.f32.gmra.mxu3 %vm117_vm1, %v354_v42 }
  0x9b   :  { %v83_v49 = vpop.permute.xlu0 %82 }
  0x9c   :  { %vm103_vm2 = vcmp.eq.s32.totalorder %v37_v38, %v83_v49 }
  0x9d   :  { %v43_v50 = vpop.permute.xlu1 %42 }
  0x9e   :  { %vm63_vm3 = vcmp.eq.s32.totalorder %v37_v38, %v43_v50 }
  0x9f   :  { %vm111_vm4 = vmor %vm63_vm3, %vm103_vm2 }
  0xa0   :  { %227 = vmatmul.msk.f32.gmra.mxu0 %vm111_vm4, %v354_v42 }
  0xa6   :  { %v89_v52 = vpop.permute.xlu1 %88 }
  0xa7   :  { %vm105_vm6 = vcmp.eq.s32.totalorder %v37_v38, %v89_v52 }
  0xa8   :  { %vm113_vm7 = vmor %vm65_vm5, %vm105_vm6 }
  0xa9   :  { %229 = vmatmul.msk.f32.gmra.mxu1 %vm113_vm7, %v354_v42 }
 0x101   :  { %v179_v53 = vpop.f32.mrf.mxu2 }
 0x102   :  { %195 = vst [vmem:[#allocation5 + $0x20] sm:$0xff] %v179_v53 }
 0x109   :  { %v182_v54 = vpop.f32.mrf.mxu2  ;;  %v185_v55 = vpop.f32.mrf.mxu3 }
 0x10a   :  { %196 = vst [vmem:[#allocation5 + $0x28] sm:$0xff] %v182_v54 }
 0x10b   :  { %v167_v56 = vpop.f32.mrf.mxu0  ;;  %197 = vst [vmem:[#allocation5 + $0x30] sm:$0xff] %v185_v55 }
 0x10c   :  { %v173_v57 = vpop.f32.mrf.mxu1  ;;  %191 = vst [vmem:[#allocation5] sm:$0xff] %v167_v56 }
 0x10d   :  { %193 = vst [vmem:[#allocation5 + $0x10] sm:$0xff] %v173_v57 }
 0x11b   :  { %v188_v58 = vpop.f32.mrf.mxu3 }
 0x11c   :  { %198 = vst [vmem:[#allocation5 + $0x38] sm:$0xff] %v188_v58 }
 0x11d   :  { %v170_v59 = vpop.f32.mrf.mxu0 }
 0x11e   :  { %192 = vst [vmem:[#allocation5 + $0x8] sm:$0xff] %v170_v59 }
 0x126   :  { %v176_v60 = vpop.f32.mrf.mxu1 }
 0x127   :  { %194 = vst [vmem:[#allocation5 + $0x18] sm:$0xff] %v176_v60 }
 0x128   :  { %211 = dma.vmem_to_hbm [thread:$0]  %s204_s3, 1024, %s206_s6, [#allocation4], %s350_s14, %s350_s14, %s351_s15  }
 0x129   :  { %347 = dma.done.wait [#allocation4], 1024  }
 0x12a   :  { %348 = vsyncadd [#allocation4], 4294966272 }
 0x12b   :  { %216 = vsyncpa [#allocation3], 1 }
 0x12c   :  { %217 = vsyncpa [#allocation4], 1 }

</bundles_post_ra>
